<compile_context>
chip_gen: v5e
topology: v5e:2x2
jax: 0.10.0
libtpu: 0.0.40
codegen_flags: <defaults>
</compile_context>

<pallas_src>
import numpy as np

import jax
import jax.numpy as jnp
from jax.experimental import pallas as pl
from jax.experimental.pallas import tpu as pltpu


# --------------------------------------------------------------------------- #
# Small helpers
# --------------------------------------------------------------------------- #
def _cdiv(a: int, b: int) -> int:
    return -(-a // b)


def _round_up(x: int, m: int) -> int:
    return _cdiv(x, m) * m


def _tpu_vmem_and_cores():
    """Per-core VMEM capacity (bytes) and whether this looks like a 2-TC chip."""
    cap = 0
    try:
        info = pltpu.get_tpu_info()
        cap = int(getattr(info, "vmem_capacity_bytes", 0) or 0)
    except Exception:
        cap = 0
    kind = ""
    try:
        kind = jax.devices()[0].device_kind.lower()
    except Exception:
        kind = ""
    two_cores = "v7" in kind
    if two_cores:
        cap = min(cap, 64 << 20) if cap > 0 else (64 << 20)   # 64 MiB / TC on v7x
    elif cap <= 0:
        if "v5" in kind or "v6" in kind:
            cap = 128 << 20
        else:
            cap = 64 << 20          # unknown chip: conservative, safe everywhere
    return cap, two_cores


def _mxu_dtype(x_dtype, override):
    """Dtype fed to the MXU.  f32 inputs default to bf16 (f32 accumulation)."""
    if override is not None:
        return override
    return jnp.bfloat16 if np.dtype(x_dtype) == np.float32 else x_dtype


def _select_tiles(M, K, N, isz, osz, budget):
    """Pick (tm, tn, tk, k_tiled, vmem_need_bytes) under a VMEM byte budget."""
    sub = max(8, 32 // isz)                         # sublane rows for this dtype

    def clamp_m(t):
        return M if t >= M else max(sub, (t // sub) * sub)

    def clamp_n(t):
        return N if t >= N else max(128, (t // 128) * 128)

    def need(tm, tn, tk, k_tiled):
        gn = _cdiv(N, tn)
        gk = _cdiv(K, tk) if k_tiled else 1
        w_bufs = 1 if (gn == 1 and gk == 1) else 2  # Buffered(1) when invariant
        b = (2 * tm * tk * isz                      # double-buffered patch tiles
             + w_bufs * tk * tn * isz               # weight tile(s)
             + w_bufs * tn * 4                      # f32 bias tile(s)
             + 2 * tm * tn * osz)                   # double-buffered out tiles
        if k_tiled:
            b += tm * tn * 4                        # f32 accumulator scratch
        return b

    tm_floor = clamp_m(256)

    # Preferred: un-tiled K; whole Cout resident when possible (weight fetched
    # exactly once); grow tm while the budget allows.
    for tn in dict.fromkeys(clamp_n(t) for t in (N, 2048, 1024, 512, 256, 128)):
        if need(tm_floor, tn, K, False) > budget:
            continue
        tm = tm_floor
        for tm_c in (1024, 512):
            t = clamp_m(tm_c)
            if t > tm and need(t, tn, K, False) <= budget:
                tm = t
                break
        return tm, tn, K, False, need(tm, tn, K, False)

    # Fallback: tile K with an f32 accumulator (large-K 3D convolutions).
    tm = clamp_m(256)
    tn = clamp_n(512)
    tk = K if K <= 128 else (K // 128) * 128
    while tk > 128 and need(tm, tn, tk, True) > budget:
        tk = max(128, ((tk // 2) // 128) * 128)
    while tm > sub and need(tm, tn, tk, True) > budget:
        tm = max(sub, ((tm // 2) // sub) * sub)
    if need(tm, tn, tk, True) > budget:
        tn = clamp_n(128)
    return tm, tn, tk, True, need(tm, tn, tk, True)


# --------------------------------------------------------------------------- #
# Kernels: one (tm, tn) tile of  out = patches @ w_flat (+ bias)
# --------------------------------------------------------------------------- #
def _mm_kernel(p_ref, w_ref, o_ref):
    o_ref[...] = jnp.dot(p_ref[...], w_ref[...],
                         preferred_element_type=jnp.float32).astype(o_ref.dtype)


def _mm_bias_kernel(p_ref, w_ref, b_ref, o_ref):
    acc = jnp.dot(p_ref[...], w_ref[...], preferred_element_type=jnp.float32)
    o_ref[...] = (acc + b_ref[...]).astype(o_ref.dtype)


def _mm_ktiled_kernel(p_ref, w_ref, o_ref, acc_ref):
    @pl.when(pl.program_id(2) == 0)
    def _():
        acc_ref[...] = jnp.zeros_like(acc_ref)

    acc_ref[...] += jnp.dot(p_ref[...], w_ref[...],
                            preferred_element_type=jnp.float32)

    @pl.when(pl.program_id(2) == pl.num_programs(2) - 1)
    def _():
        o_ref[...] = acc_ref[...].astype(o_ref.dtype)


def _mm_bias_ktiled_kernel(p_ref, w_ref, b_ref, o_ref, acc_ref):
    @pl.when(pl.program_id(2) == 0)
    def _():
        acc_ref[...] = jnp.zeros_like(acc_ref)

    acc_ref[...] += jnp.dot(p_ref[...], w_ref[...],
                            preferred_element_type=jnp.float32)

    @pl.when(pl.program_id(2) == pl.num_programs(2) - 1)
    def _():
        o_ref[...] = (acc_ref[...] + b_ref[...]).astype(o_ref.dtype)


# --------------------------------------------------------------------------- #
# GEMM driver
# --------------------------------------------------------------------------- #
def conv_patch_matmul(patches, w_flat, bias=None, *, out_dtype=None):
    """patches: (M, K), w_flat: (K, N), bias: (N,) or None -> (M, N)."""
    M, K = patches.shape
    K2, N = w_flat.shape
    assert K == K2, (K, K2)
    out_dtype = np.dtype(out_dtype if out_dtype is not None else patches.dtype)
    isz = np.dtype(patches.dtype).itemsize
    osz = out_dtype.itemsize
    sub = max(8, 32 // isz)

    cap, two_cores = _tpu_vmem_and_cores()
    budget = min(cap - (8 << 20), 104 << 20)        # ~104 MiB v5e/v6e, ~56 MiB v7x

    tm, tn, tk, k_tiled, vmem_need = _select_tiles(M, K, N, isz, osz, budget)

    # v7x has 2 TensorCores sharded over the parallel grid axes: make sure a
    # small problem still yields >= 2 parallel steps so neither core idles.
    if two_cores and not k_tiled and _cdiv(M, tm) * _cdiv(N, tn) == 1:
        if M > sub:
            half = _round_up(_cdiv(M, 2), sub)
            if half < M:
                tm = half
        elif N >= 256:
            tn = _round_up(_cdiv(N, 2), 128)

    gm, gn = _cdiv(M, tm), _cdiv(N, tn)
    has_bias = bias is not None

    operands = [patches, w_flat]
    if has_bias:
        operands.append(bias.astype(jnp.float32).reshape(1, N))

    if k_tiled:
        # (i, j, k) grid with K innermost and an f32 accumulator scratch.
        gk = _cdiv(K, tk)
        grid = (gm, gn, gk)
        p_spec = pl.BlockSpec((tm, tk), lambda i, j, k: (i, k))
        w_spec = pl.BlockSpec((tk, tn), lambda i, j, k: (k, j))
        b_spec = pl.BlockSpec((1, tn), lambda i, j, k: (0, j))
        o_spec = pl.BlockSpec((tm, tn), lambda i, j, k: (i, j))
        scratch = [pltpu.VMEM((tm, tn), jnp.float32)]
        semantics = ("parallel", "parallel", "arbitrary")
        kernel = _mm_bias_ktiled_kernel if has_bias else _mm_ktiled_kernel
    elif gn == 1:
        # Whole (K, Cout) weight slab + bias resident once, single-buffered.
        grid = (gm,)
        inv = dict(pipeline_mode=pl.Buffered(1))
        p_spec = pl.BlockSpec((tm, K), lambda i: (i, 0))
        w_spec = pl.BlockSpec((K, tn), lambda i: (0, 0), **inv)
        b_spec = pl.BlockSpec((1, tn), lambda i: (0, 0), **inv)
        o_spec = pl.BlockSpec((tm, tn), lambda i: (i, 0))
        scratch = []
        semantics = ("parallel",)
        kernel = _mm_bias_kernel if has_bias else _mm_kernel
    else:
        # Cout tiled: N on the OUTER axis so the weight block is invariant
        # across the inner M sweep (fetched gn times total, not gm*gn).
        grid = (gn, gm)
        p_spec = pl.BlockSpec((tm, K), lambda j, i: (i, 0))
        w_spec = pl.BlockSpec((K, tn), lambda j, i: (0, j))
        b_spec = pl.BlockSpec((1, tn), lambda j, i: (0, j))
        o_spec = pl.BlockSpec((tm, tn), lambda j, i: (i, j))
        scratch = []
        semantics = ("parallel", "parallel")
        kernel = _mm_bias_kernel if has_bias else _mm_kernel

    in_specs = [p_spec, w_spec] + ([b_spec] if has_bias else [])

    # Pass the scoped-VMEM limit unconditionally (v5e defaults to 16 MiB),
    # generation-aware and capped below the physical per-core capacity.
    vmem_limit = int(min(cap - (4 << 20),
                         max(vmem_need + vmem_need // 4 + (2 << 20), 32 << 20)))

    return pl.pallas_call(
        kernel,
        out_shape=jax.ShapeDtypeStruct((M, N), out_dtype),
        grid=grid,
        in_specs=in_specs,
        out_specs=o_spec,
        scratch_shapes=scratch,
        compiler_params=pltpu.CompilerParams(
            dimension_semantics=semantics,
            # Best-effort hint only: lets XLA fold the patch-rearrangement copy
            # into this kernel's input DMA when it can (not relied upon).
            allow_input_fusion=[True] + [False] * (len(operands) - 1),
            vmem_limit_bytes=vmem_limit,
        ),
    )(*operands)


# --------------------------------------------------------------------------- #
# Module-level forward wrappers
# --------------------------------------------------------------------------- #
def conv_forward(x, weight, bias, kernel_size, *, out_dtype=None, mxu_dtype=None):
    """2D branch: F.conv2d(x, w, b, stride=kernel).flatten(2).permute(0, 2, 1)."""
    kh, kw = kernel_size
    B, Cin, H, W = x.shape
    Cout = weight.shape[0]
    assert weight.shape == (Cout, Cin, kh, kw)
    assert H % kh == 0 and W % kw == 0, "stride==kernel conv needs exact tiling"
    nh, nw = H // kh, W // kw
    P = nh * nw
    out_dtype = out_dtype if out_dtype is not None else x.dtype
    cdt = _mxu_dtype(x.dtype, mxu_dtype)

    # Patch rearrangement + MXU-dtype cast in one XLA copy pass:
    # (B, Cin, nh, kh, nw, kw) -> (B, nh, nw, Cin, kh, kw) -> (B*P, Cin*kh*kw)
    # TODO(synk): gather patches inside the kernel (per-(c,dh) DMA into a
    # (tm, K) VMEM staging buffer) so this rearranged copy never round-trips
    # HBM; Mosaic's in-kernel (Cin,kh,nw,kw)->(nw,K) relayout is the blocker.
    xp = x.reshape(B, Cin, nh, kh, nw, kw).astype(cdt)
    patches = jnp.transpose(xp, (0, 2, 4, 1, 3, 5)).reshape(B * P, Cin * kh * kw)

    w_flat = jnp.transpose(weight.reshape(Cout, -1), (1, 0)).astype(cdt)
    b = None if bias is None else bias.astype(jnp.float32)

    y = conv_patch_matmul(patches, w_flat, b, out_dtype=out_dtype)
    return y.reshape(B, P, Cout)


def conv3d_forward(x, weight, bias, kernel_size, *, out_dtype=None, mxu_dtype=None):
    """3D branch: x.view(-1, Cin, k0, k1, k2), conv3d stride=kernel -> (1, N, Cout)."""
    k0, k1, k2 = kernel_size
    Cout, Cin = weight.shape[0], weight.shape[1]
    assert weight.shape == (Cout, Cin, k0, k1, k2)
    out_dtype = out_dtype if out_dtype is not None else x.dtype
    cdt = _mxu_dtype(x.dtype, mxu_dtype)

    patches = x.reshape(-1, Cin * k0 * k1 * k2).astype(cdt)   # free reshape
    w_flat = jnp.transpose(weight.reshape(Cout, -1), (1, 0)).astype(cdt)
    b = None if bias is None else bias.astype(jnp.float32)

    y = conv_patch_matmul(patches, w_flat, b, out_dtype=out_dtype)
    return y[None]


# --------------------------------------------------------------------------- #
# Pure-JAX references (correctness checks only)
# --------------------------------------------------------------------------- #
def _reference_forward_2d(x, weight, bias, kernel_size):
    kh, kw = kernel_size
    B, Cin, H, W = x.shape
    Cout = weight.shape[0]
    nh, nw = H // kh, W // kw
    xp = x.reshape(B, Cin, nh, kh, nw, kw).astype(jnp.float32)
    patches = jnp.transpose(xp, (0, 2, 4, 1, 3, 5)).reshape(B * nh * nw, -1)
    wf = weight.reshape(Cout, -1).astype(jnp.float32)
    y = jax.lax.dot_general(patches, wf, (((1,), (1,)), ((), ())),
                            precision=jax.lax.Precision.HIGHEST)
    if bias is not None:
        y = y + bias.astype(jnp.float32)
    return y.reshape(B, nh * nw, Cout)


def _reference_forward_3d(x, weight, bias):
    Cout = weight.shape[0]
    p = x.reshape(x.shape[0], -1).astype(jnp.float32)
    wf = weight.reshape(Cout, -1).astype(jnp.float32)
    y = jax.lax.dot_general(p, wf, (((1,), (1,)), ((), ())),
                            precision=jax.lax.Precision.HIGHEST)
    if bias is not None:
        y = y + bias.astype(jnp.float32)
    return y[None]


if __name__ == "__main__":
    key = jax.random.PRNGKey(0)
    kx, kw_, kb = jax.random.split(key, 3)

    # ---- 2D branch (patch embedding): B=2, Cin=4, 16x16 image, 8x8 patches ----
    B, Cin, H, W = 2, 4, 16, 16
    Cout = 32
    ksz = (8, 8)
    x = jax.random.normal(kx, (B, Cin, H, W), dtype=jnp.float32)
    w = jax.random.normal(kw_, (Cout, Cin, *ksz), dtype=jnp.float32) * 0.05
    b = jax.random.normal(kb, (Cout,), dtype=jnp.float32) * 0.1

    # Exact f32 MXU path.
    y32 = jax.block_until_ready(conv_forward(x, w, b, ksz, mxu_dtype=jnp.float32))
    y_ref = _reference_forward_2d(x, w, b, ksz)
    assert y32.shape == y_ref.shape == (B, (H // 8) * (W // 8), Cout)
    assert jnp.allclose(y32, y_ref, atol=1e-4, rtol=1e-4), "2D f32 mismatch"

    # Default path: f32 inputs fed to the MXU as bf16 (f32 accumulation).
    ybf = jax.block_until_ready(conv_forward(x, w, b, ksz))
    y_ref_bf = _reference_forward_2d(x.astype(jnp.bfloat16), w.astype(jnp.bfloat16), b, ksz)
    assert jnp.allclose(ybf, y_ref_bf, atol=1e-2, rtol=1e-2), "2D bf16 mismatch"

    # bias=None variant (kernel without the bias operand).
    ynb = jax.block_until_ready(conv_forward(x, w, None, ksz, mxu_dtype=jnp.float32))
    ynb_ref = _reference_forward_2d(x, w, None, ksz)
    assert jnp.allclose(ynb, ynb_ref, atol=1e-4, rtol=1e-4), "2D no-bias mismatch"

    # ---- 3D branch: 8 single-patch samples, kernel (2, 4, 4) ----
    k3 = (2, 4, 4)
    N3, Cin3, Cout3 = 8, 4, 32
    x3 = jax.random.normal(kx, (N3, Cin3, *k3), dtype=jnp.float32)
    w3 = jax.random.normal(kw_, (Cout3, Cin3, *k3), dtype=jnp.float32) * 0.05
    b3 = jax.random.normal(kb, (Cout3,), dtype=jnp.float32) * 0.1

    y3 = jax.block_until_ready(conv3d_forward(x3, w3, b3, k3, mxu_dtype=jnp.float32))
    y3_ref = _reference_forward_3d(x3, w3, b3)
    assert y3.shape == y3_ref.shape == (1, N3, Cout3)
    assert jnp.allclose(y3, y3_ref, atol=1e-4, rtol=1e-4), "3D f32 mismatch"

    y3bf = jax.block_until_ready(conv3d_forward(x3, w3, b3, k3))   # default bf16 path
    y3_ref_bf = _reference_forward_3d(x3.astype(jnp.bfloat16), w3.astype(jnp.bfloat16), b3)
    assert jnp.allclose(y3bf, y3_ref_bf, atol=1e-2, rtol=1e-2), "3D bf16 mismatch"

    print("KERNEL_OK")
</pallas_src>

<mosaic_0001>
module attributes {stable_mosaic.version = 11 : i64} {
  func.func @_mm_bias_kernel(%arg0: i32, %arg1: memref<8x256xf32, #tpu.memory_space<vmem>>, %arg2: memref<256x32xf32, #tpu.memory_space<vmem>>, %arg3: memref<1x32xf32, #tpu.memory_space<vmem>>, %arg4: memref<8x32xf32, #tpu.memory_space<vmem>>) attributes {dimension_semantics = [#tpu.dimension_semantics<parallel>], iteration_bounds = array<i64: 1>, scalar_prefetch = 0 : i64, scratch_operands = 0 : i64, tpu.core_type = #tpu.core_type<tc>, window_params = [{transform_indices = @transform_0, window_bounds = array<i64: 8, 256>}, {pipeline_mode = #tpu.pipeline_mode<synchronous>, transform_indices = @transform_1, window_bounds = array<i64: 256, 32>}, {pipeline_mode = #tpu.pipeline_mode<synchronous>, transform_indices = @transform_2, window_bounds = array<i64: 1, 32>}, {transform_indices = @transform_3, window_bounds = array<i64: 8, 32>}]} {
    %c0 = arith.constant 0 : index
    %c0_0 = arith.constant 0 : index
    %0 = vector.load %arg1[%c0, %c0_0] : memref<8x256xf32, #tpu.memory_space<vmem>>, vector<8x256xf32>
    %c0_1 = arith.constant 0 : index
    %c0_2 = arith.constant 0 : index
    %1 = vector.load %arg2[%c0_1, %c0_2] : memref<256x32xf32, #tpu.memory_space<vmem>>, vector<256x32xf32>
    %cst = arith.constant dense<0.000000e+00> : vector<8x32xf32>
    %2 = tpu.matmul %0, %1, %cst {dimension_numbers = #tpu.dot_dimension_numbers<[1], [0], [0], [1], [0, 0, 1, 1], [], []>} : vector<8x256xf32>, vector<256x32xf32>, vector<8x32xf32> -> vector<8x32xf32>
    %c0_3 = arith.constant 0 : index
    %c0_4 = arith.constant 0 : index
    %3 = vector.load %arg3[%c0_3, %c0_4] : memref<1x32xf32, #tpu.memory_space<vmem>>, vector<1x32xf32>
    %4 = vector.broadcast %3 : vector<1x32xf32> to vector<8x32xf32>
    %5 = arith.addf %2, %4 : vector<8x32xf32>
    %c0_5 = arith.constant 0 : index
    %c0_6 = arith.constant 0 : index
    %6 = vector.load %arg4[%c0_5, %c0_6] : memref<8x32xf32, #tpu.memory_space<vmem>>, vector<8x32xf32>
    tpu.vector_store %arg4[%c0_5, %c0_6], %5 {strides = array<i32>} : memref<8x32xf32, #tpu.memory_space<vmem>>, vector<8x32xf32>,
    return
  }
  func.func @transform_0(%arg0: i32) -> (i32, i32) {
    %c0_i32 = arith.constant 0 : i32
    %c0_i32_0 = arith.constant 0 : i32
    return %arg0, %c0_i32 : i32, i32
  }
  func.func @transform_1(%arg0: i32) -> (i32, i32) {
    %c0_i32 = arith.constant 0 : i32
    %c0_i32_0 = arith.constant 0 : i32
    %c0_i32_1 = arith.constant 0 : i32
    return %c0_i32, %c0_i32_0 : i32, i32
  }
  func.func @transform_2(%arg0: i32) -> (i32, i32) {
    %c0_i32 = arith.constant 0 : i32
    %c0_i32_0 = arith.constant 0 : i32
    %c0_i32_1 = arith.constant 0 : i32
    return %c0_i32, %c0_i32_0 : i32, i32
  }
  func.func @transform_3(%arg0: i32) -> (i32, i32) {
    %c0_i32 = arith.constant 0 : i32
    %c0_i32_0 = arith.constant 0 : i32
    return %arg0, %c0_i32 : i32, i32
  }
}

</mosaic_0001>

<bundles_post_ra>
// kernel: tpu_custom_call.1
= control target key start
LH: loop header
LB: loop body
LE: loop exit
PB: predicated region body
PF: predicated region fallthrough
CT: control target
= control target key end

     0   :  { %s268_s0 = inlined_call_operand.vmem [shape: f32[8,256], index: 0, kind: input, shape index: {}]   ;;  %s269_s1 = inlined_call_operand.vmem [shape: f32[256,32], index: 1, kind: input, shape index: {}]   ;;  %s270_s2 = inlined_call_operand.vmem [shape: f32[1,32], index: 2, kind: input, shape index: {}]   ;;  %s271_s3 = inlined_call_operand.hbm [shape: f32[8,32], index: 3, kind: output, shape index: {}]  }
   0x1   :  { %v32_v0 = vld [vmem:[%s269_s1 + $0x78] sm:$0xff]  ;;  %v31_v1 = vld [vmem:[%s269_s1 + $0x70] sm:$0xff]  ;;  %v30_v4 = vld [vmem:[%s269_s1 + $0x68] sm:$0xff] }
   0x2   :  { %v48_v2 = vld [vmem:[%s269_s1 + $0xf8] sm:$0xff]  ;;  %53 = vmatpush.msra.mxu0 %v32_v0  ;;  %v47_v3 = vld [vmem:[%s269_s1 + $0xf0] sm:$0xff]  ;;  %v46_v5 = vld [vmem:[%s269_s1 + $0xe8] sm:$0xff] }
   0x3   :  { %73 = vmatpush.msra.mxu1 %v48_v2  ;;  %v29_v6 = vld [vmem:[%s269_s1 + $0x60] sm:$0xff]  ;;  %v28_v8 = vld [vmem:[%s269_s1 + $0x58] sm:$0xff]  ;;  %v27_v10 = vld [vmem:[%s269_s1 + $0x50] sm:$0xff] }
   0x4   :  { %54 = vmatpush.msra.mxu0 %v31_v1  ;;  %v45_v7 = vld [vmem:[%s269_s1 + $0xe0] sm:$0xff]  ;;  %v44_v9 = vld [vmem:[%s269_s1 + $0xd8] sm:$0xff]  ;;  %v43_v11 = vld [vmem:[%s269_s1 + $0xd0] sm:$0xff] }
   0x5   :  { %74 = vmatpush.msra.mxu1 %v47_v3  ;;  %v26_v12 = vld [vmem:[%s269_s1 + $0x48] sm:$0xff]  ;;  %v25_v14 = vld [vmem:[%s269_s1 + $0x40] sm:$0xff] }
   0x6   :  { %55 = vmatpush.msra.mxu0 %v30_v4  ;;  %v42_v13 = vld [vmem:[%s269_s1 + $0xc8] sm:$0xff]  ;;  %v41_v15 = vld [vmem:[%s269_s1 + $0xc0] sm:$0xff] }
   0x7   :  { %75 = vmatpush.msra.mxu1 %v46_v5 }
   0x8   :  { %56 = vmatpush.msra.mxu0 %v29_v6 }
   0x9   :  { %76 = vmatpush.msra.mxu1 %v45_v7 }
   0xa   :  { %57 = vmatpush.msra.mxu0 %v28_v8 }
   0xb   :  { %77 = vmatpush.msra.mxu1 %v44_v9 }
   0xc   :  { %58 = vmatpush.msra.mxu0 %v27_v10 }
   0xd   :  { %78 = vmatpush.msra.mxu1 %v43_v11 }
   0xe   :  { %8 = vsyncpa [#allocation3], 0  ;;  %59 = vmatpush.msra.mxu0 %v26_v12  ;;  %v24_v16 = vld [vmem:[%s269_s1 + $0x38] sm:$0xff]  ;;  %v23_v18 = vld [vmem:[%s269_s1 + $0x30] sm:$0xff]  ;;  %s102_s4 = sshll.u32 %s271_s3, 4  ;;  %vm93_vm0 = vcmask 261120   ;;  %s103_s4 = int_to_ptr.hbm [resolvable:$true] %s102_s4 }
   0xf   :  { %79 = vmatpush.msra.mxu1 %v42_v13  ;;  %v40_v17 = vld [vmem:[%s269_s1 + $0xb8] sm:$0xff]  ;;  %v39_v19 = vld [vmem:[%s269_s1 + $0xb0] sm:$0xff]  ;;  %v22_v20 = vld [vmem:[%s269_s1 + $0x28] sm:$0xff] }
  0x10   :  { %60 = vmatpush.msra.mxu0 %v25_v14  ;;  %v38_v21 = vld [vmem:[%s269_s1 + $0xa8] sm:$0xff]  ;;  %v21_v22 = vld [vmem:[%s269_s1 + $0x20] sm:$0xff]  ;;  %v20_v24 = vld [vmem:[%s269_s1 + $0x18] sm:$0xff] }
  0x11   :  { %80 = vmatpush.msra.mxu1 %v41_v15  ;;  %v37_v23 = vld [vmem:[%s269_s1 + $0xa0] sm:$0xff]  ;;  %v36_v25 = vld [vmem:[%s269_s1 + $0x98] sm:$0xff]  ;;  %v19_v26 = vld [vmem:[%s269_s1 + $0x10] sm:$0xff] }
  0x12   :  { %61 = vmatpush.msra.mxu0 %v24_v16  ;;  %v35_v27 = vld [vmem:[%s269_s1 + $0x90] sm:$0xff]  ;;  %v18_v28 = vld [vmem:[%s269_s1 + $0x8] sm:$0xff]  ;;  %v17_v30 = vld [vmem:[%s269_s1] sm:$0xff] }
  0x13   :  { %81 = vmatpush.msra.mxu1 %v40_v17  ;;  %v34_v29 = vld [vmem:[%s269_s1 + $0x88] sm:$0xff]  ;;  %v33_v31 = vld [vmem:[%s269_s1 + $0x80] sm:$0xff]  ;;  %s139_s1 = smov [#allocation2]  }
  0x14   :  { %62 = vmatpush.msra.mxu0 %v23_v18  ;;  %v15_v32 = vld [vmem:[%s268_s0] sm:$0xff]  ;;  %v16_v33 = vld [vmem:[%s268_s0 + $0x8] sm:$0xff]  ;;  %s100_s28 = sshll.u32 %s139_s1, 4  ;;  %s101_s28 = int_to_ptr.vmem [resolvable:$true] %s100_s28 }
  0x15   :  { %82 = vmatpush.msra.mxu1 %v39_v19  ;;  %v112_v34 = vld [vmem:[%s270_s2] ss:$0 sm:$0xff] }
  0x16   :  { %63 = vmatpush.msra.mxu0 %v22_v20 }
  0x17   :  { %83 = vmatpush.msra.mxu1 %v38_v21 }
  0x18   :  { %64 = vmatpush.msra.mxu0 %v21_v22 }
  0x19   :  { %84 = vmatpush.msra.mxu1 %v37_v23 }
  0x1a   :  { %65 = vmatpush.msra.mxu0 %v20_v24 }
  0x1b   :  { %85 = vmatpush.msra.mxu1 %v36_v25 }
  0x1c   :  { %66 = vmatpush.msra.mxu0 %v19_v26 }
  0x1d   :  { %86 = vmatpush.msra.mxu1 %v35_v27 }
  0x1e   :  { %67 = vmatpush.msra.mxu0 %v18_v28 }
  0x1f   :  { %87 = vmatpush.msra.mxu1 %v34_v29 }
  0x20   :  { %68 = vmatpush.msra.mxu0 %v17_v30 }
  0x21   :  { %88 = vmatpush.msra.mxu1 %v33_v31  ;;  %69 = vmatmul.f32.vlgmr.msra.gmra.mxu0 %v15_v32 }
  0x22   :  { %89 = vmatmul.f32.vlgmr.msra.gmra.mxu1 %v16_v33 }
  0x9e   :  { %v70_v35 = vpop.f32.mrf.mxu0 }
  0x9f   :  { %v90_v36 = vpop.f32.mrf.mxu1  ;;  %v71_v37 = vadd.f32 %v112_v34, %v70_v35 }
  0xa1   :  { %v91_v38 = vadd.f32 %v90_v36, %v71_v37 }
  0xa3   :  { %94 = vst.msk [vmem:[#allocation2] sm:$0xff] %vm93_vm0, %v91_v38 }
  0xa4   :  { %105 = dma.vmem_to_hbm [thread:$0]  %s101_s28, 128, %s103_s4, [#allocation3]  }
  0xa5   :  { %137 = dma.done.wait [#allocation3], 128  }
  0xa6   :  { %138 = vsyncadd [#allocation3], 4294967168 }
  0xa7   :  { %110 = vsyncpa [#allocation3], 1 }

</bundles_post_ra>
